<compile_context>
chip_gen: v5e
topology: v5e:2x2
jax: 0.10.0
libtpu: 0.0.40
codegen_flags: <defaults>
</compile_context>

<pallas_src>
import functools

import jax
import jax.numpy as jnp
from jax import lax
from jax.experimental import pallas as pl
from jax.experimental.pallas import tpu as pltpu


def _round_up(x, m):
    return (x + m - 1) // m * m


def _global_sa_kernel(x_ref, pos_ref, batch_ref, w1x_ref, w1p_ref, b1_ref,
                      w2_ref, b2_ref, out_ref, *, n_points, tile_n, b_pad):
    """One (H2-tile, N-tile) grid step of fused MLP + segmented global max pool.

    x_ref    : [tile_n, C]    bf16
    pos_ref  : [tile_n, 3]    bf16
    batch_ref: [tile_n, 1]    i32
    w1x_ref  : [C, H1p]  bf16    w1p_ref: [3, H1p] bf16    b1_ref: [1, H1p] f32
    w2_ref   : [H1p, tile_h2] bf16                         b2_ref: [1, tile_h2] f32
    out_ref  : [b_pad, tile_h2] f32   (resident accumulator across the N axis)
    """
    n_idx = pl.program_id(1)

    # Init resident accumulator at the start of each reduction strip.
    @pl.when(n_idx == 0)
    def _():
        out_ref[...] = jnp.full(out_ref.shape, -jnp.inf, out_ref.dtype)

    # ---- shared MLP: bf16 on the MXU, f32 accumulation / VPU epilogue ----
    h = (jnp.dot(x_ref[...], w1x_ref[...], preferred_element_type=jnp.float32)
         + jnp.dot(pos_ref[...], w1p_ref[...], preferred_element_type=jnp.float32)
         + b1_ref[...])
    h = jnp.maximum(h, 0.0)
    h = jnp.dot(h.astype(w2_ref.dtype), w2_ref[...],
                preferred_element_type=jnp.float32) + b2_ref[...]
    h = jnp.maximum(h, 0.0)                                  # [tile_n, tile_h2] f32

    # ---- vectorized segmented max over this tile ----
    # Valid-row mask handles the last partial N tile (rows past n_points are
    # garbage from the padded block and must not pollute the pool).
    row = n_idx * tile_n + lax.broadcasted_iota(jnp.int32, (tile_n, 1), 0)
    valid3 = (row < n_points)[:, :, None]                    # [tile_n, 1, 1]
    bidx3 = batch_ref[...][:, :, None]                       # [tile_n, 1, 1]
    seg3 = lax.broadcasted_iota(jnp.int32, (tile_n, b_pad, 1), 1)
    mask3 = (bidx3 == seg3) & valid3                         # [tile_n, b_pad, 1]

    masked = jnp.where(mask3, h[:, None, :], -jnp.inf)       # [tile_n, b_pad, tile_h2]
    tile_max = masked.max(axis=0)                            # [b_pad, tile_h2]
    out_ref[...] = jnp.maximum(out_ref[...], tile_max)       # single lane-dense store


def global_sa_module(x, pos, batch, params, num_batches, *, tile_n_max=512):
    """x: [N, C] f32, pos: [N, 3] f32, batch: [N] i32
       -> (x_out [B, H2] f32, pos_out [B, 3], batch_out [B] i32)."""
    w1, b1, w2, b2 = params                   # w1: [C+3, H1], w2: [H1, H2]
    N, C = x.shape
    P = pos.shape[1]
    H1, H2 = w1.shape[1], w2.shape[1]
    assert w1.shape[0] == C + P

    # Lane / sublane padding for dense MXU + dense stores.
    H1p = _round_up(H1, 128)
    H2p = _round_up(H2, 128)
    Bp = max(8, _round_up(num_batches, 8))

    # H2 tile: independent ("parallel") grid axis -> megacore on v7x and
    # smaller per-TC VMEM footprint under its 64 MiB budget.
    if H2p <= 256:
        tile_h2 = H2p
    elif H2p % 256 == 0:
        tile_h2 = 256
    else:
        tile_h2 = 128
    num_j = H2p // tile_h2

    # N tile: reduction ("arbitrary") axis.  512 rows keeps double-buffered
    # inputs + [tile_n, H-tile] intermediates well under the default scoped
    # VMEM limit on every generation (v5e/v6e/v7x).
    tile_n = min(tile_n_max, _round_up(N, 8))
    num_n = pl.cdiv(N, tile_n)

    cast = jnp.bfloat16
    xb = x.astype(cast)
    pb = pos.astype(cast)
    batch2d = batch.astype(jnp.int32).reshape(-1, 1)

    # Split w1 (kills the host-side concat of [x, pos]) and zero-pad the hidden
    # dims: padded H1 columns give ReLU(0)=0 and padded w2 rows are zero, so
    # the result is numerically unchanged in the valid region.
    w1x = jnp.zeros((C, H1p), cast).at[:, :H1].set(w1[:C].astype(cast))
    w1p = jnp.zeros((P, H1p), cast).at[:, :H1].set(w1[C:].astype(cast))
    b1p = jnp.zeros((1, H1p), jnp.float32).at[:, :H1].set(b1.astype(jnp.float32))
    w2p = jnp.zeros((H1p, H2p), cast).at[:H1, :H2].set(w2.astype(cast))
    b2p = jnp.zeros((1, H2p), jnp.float32).at[:, :H2].set(b2.astype(jnp.float32))

    kernel = functools.partial(_global_sa_kernel,
                               n_points=N, tile_n=tile_n, b_pad=Bp)

    pooled_pad = pl.pallas_call(
        kernel,
        out_shape=jax.ShapeDtypeStruct((Bp, H2p), jnp.float32),
        grid_spec=pltpu.PrefetchScalarGridSpec(
            num_scalar_prefetch=0,
            grid=(num_j, num_n),
            in_specs=[
                pl.BlockSpec((tile_n, C), lambda j, n: (n, 0)),     # x tile
                pl.BlockSpec((tile_n, P), lambda j, n: (n, 0)),     # pos tile
                pl.BlockSpec((tile_n, 1), lambda j, n: (n, 0)),     # batch ids
                pl.BlockSpec((C, H1p), lambda j, n: (0, 0)),        # w1x (resident)
                pl.BlockSpec((P, H1p), lambda j, n: (0, 0)),        # w1p (resident)
                pl.BlockSpec((1, H1p), lambda j, n: (0, 0)),        # b1  (resident)
                pl.BlockSpec((H1p, tile_h2), lambda j, n: (0, j)),  # w2 tile
                pl.BlockSpec((1, tile_h2), lambda j, n: (0, j)),    # b2 tile
            ],
            out_specs=pl.BlockSpec((Bp, tile_h2), lambda j, n: (0, j)),
        ),
        compiler_params=pltpu.CompilerParams(
            dimension_semantics=("parallel", "arbitrary")),
    )(xb, pb, batch2d, w1x, w1p, b1p, w2p, b2p)

    x_out = pooled_pad[:num_batches, :H2]
    pos_out = jnp.zeros((num_batches, 3), dtype=pos.dtype)
    batch_out = jnp.arange(num_batches, dtype=jnp.int32)
    return x_out, pos_out, batch_out


def make_params(key, c_in, h1, h2):
    k1, k2, k3, k4 = jax.random.split(key, 4)
    w1 = jax.random.normal(k1, (c_in, h1), jnp.float32) * 0.1
    b1 = jax.random.normal(k2, (h1,), jnp.float32) * 0.1
    w2 = jax.random.normal(k3, (h1, h2), jnp.float32) * 0.1
    b2 = jax.random.normal(k4, (h2,), jnp.float32) * 0.1
    return (w1, b1, w2, b2)


def _reference(x, pos, batch, params, num_batches):
    """Pure-JAX reference with matching bf16-matmul / f32-accumulate precision."""
    w1, b1, w2, b2 = params
    cast = jnp.bfloat16
    h = jnp.concatenate([x, pos], axis=1).astype(cast)
    h = jnp.maximum(jnp.dot(h, w1.astype(cast),
                            preferred_element_type=jnp.float32) + b1, 0.0)
    h = jnp.maximum(jnp.dot(h.astype(cast), w2.astype(cast),
                            preferred_element_type=jnp.float32) + b2, 0.0)
    out = jnp.full((num_batches, h.shape[1]), -jnp.inf, jnp.float32)
    out = out.at[batch].max(h)
    return out


if __name__ == "__main__":
    key = jax.random.PRNGKey(0)
    kx, kp, kw = jax.random.split(key, 3)

    N, C, B = 16, 4, 2          # 16 points, 4 input features, 2 graphs in the batch
    H1, H2 = 32, 64             # synthetic shared MLP: [C+3, 32, 64]

    x = jax.random.normal(kx, (N, C), jnp.float32)
    pos = jax.random.normal(kp, (N, 3), jnp.float32)
    batch = jnp.repeat(jnp.arange(B, dtype=jnp.int32), N // B)   # [0]*8 + [1]*8
    params = make_params(kw, C + 3, H1, H2)

    x_out, pos_out, batch_out = global_sa_module(x, pos, batch, params, B)
    jax.block_until_ready((x_out, pos_out, batch_out))

    ref = _reference(x, pos, batch, params, B)
    assert x_out.shape == (B, H2) and pos_out.shape == (B, 3) and batch_out.shape == (B,)
    assert jnp.allclose(x_out, ref, atol=2e-3, rtol=2e-3), float(jnp.max(jnp.abs(x_out - ref)))
    assert jnp.all(pos_out == 0.0)
    assert jnp.array_equal(batch_out, jnp.arange(B, dtype=jnp.int32))

    print("KERNEL_OK")
</pallas_src>

<mosaic_0001>
module attributes {stable_mosaic.version = 11 : i64} {
  func.func @_global_sa_kernel(%arg0: i32, %arg1: i32, %arg2: memref<16x4xbf16, #tpu.memory_space<vmem>>, %arg3: memref<16x3xbf16, #tpu.memory_space<vmem>>, %arg4: memref<16x1xi32, #tpu.memory_space<vmem>>, %arg5: memref<4x128xbf16, #tpu.memory_space<vmem>>, %arg6: memref<3x128xbf16, #tpu.memory_space<vmem>>, %arg7: memref<1x128xf32, #tpu.memory_space<vmem>>, %arg8: memref<128x128xbf16, #tpu.memory_space<vmem>>, %arg9: memref<1x128xf32, #tpu.memory_space<vmem>>, %arg10: memref<8x128xf32, #tpu.memory_space<vmem>>) attributes {dimension_semantics = [#tpu.dimension_semantics<parallel>, #tpu.dimension_semantics<arbitrary>], iteration_bounds = array<i64: 1, 1>, scalar_prefetch = 0 : i64, scratch_operands = 0 : i64, tpu.core_type = #tpu.core_type<tc>, window_params = [{transform_indices = @transform_0, window_bounds = array<i64: 16, 4>}, {transform_indices = @transform_1, window_bounds = array<i64: 16, 3>}, {transform_indices = @transform_2, window_bounds = array<i64: 16, 1>}, {pipeline_mode = #tpu.pipeline_mode<synchronous>, transform_indices = @transform_3, window_bounds = array<i64: 4, 128>}, {pipeline_mode = #tpu.pipeline_mode<synchronous>, transform_indices = @transform_4, window_bounds = array<i64: 3, 128>}, {pipeline_mode = #tpu.pipeline_mode<synchronous>, transform_indices = @transform_5, window_bounds = array<i64: 1, 128>}, {transform_indices = @transform_6, window_bounds = array<i64: 128, 128>}, {transform_indices = @transform_7, window_bounds = array<i64: 1, 128>}, {transform_indices = @transform_8, window_bounds = array<i64: 8, 128>}]} {
    %c0_i32 = arith.constant 0 : i32
    %0 = arith.cmpi eq, %arg1, %c0_i32 : i32
    %1 = arith.extui %0 : i1 to i32
    %c0_i32_0 = arith.constant 0 : i32
    %2 = arith.cmpi ne, %1, %c0_i32_0 : i32
    scf.if %2 {
      %cst_27 = arith.constant 0xFF800000 : f32
      %48 = vector.broadcast %cst_27 : f32 to vector<8x128xf32>
      %c0_28 = arith.constant 0 : index
      %c0_29 = arith.constant 0 : index
      %49 = vector.load %arg10[%c0_28, %c0_29] : memref<8x128xf32, #tpu.memory_space<vmem>>, vector<8x128xf32>
      tpu.vector_store %arg10[%c0_28, %c0_29], %48 {strides = array<i32>} : memref<8x128xf32, #tpu.memory_space<vmem>>, vector<8x128xf32>,
    } else {
    }
    %c0 = arith.constant 0 : index
    %c0_1 = arith.constant 0 : index
    %3 = vector.load %arg2[%c0, %c0_1] : memref<16x4xbf16, #tpu.memory_space<vmem>>, vector<16x4xbf16>
    %c0_2 = arith.constant 0 : index
    %c0_3 = arith.constant 0 : index
    %4 = vector.load %arg5[%c0_2, %c0_3] : memref<4x128xbf16, #tpu.memory_space<vmem>>, vector<4x128xbf16>
    %cst = arith.constant dense<0.000000e+00> : vector<16x128xf32>
    %5 = tpu.matmul %3, %4, %cst {dimension_numbers = #tpu.dot_dimension_numbers<[1], [0], [0], [1], [0, 0, 1, 1], [], []>} : vector<16x4xbf16>, vector<4x128xbf16>, vector<16x128xf32> -> vector<16x128xf32>
    %c0_4 = arith.constant 0 : index
    %c0_5 = arith.constant 0 : index
    %6 = vector.load %arg3[%c0_4, %c0_5] : memref<16x3xbf16, #tpu.memory_space<vmem>>, vector<16x3xbf16>
    %c0_6 = arith.constant 0 : index
    %c0_7 = arith.constant 0 : index
    %7 = vector.load %arg6[%c0_6, %c0_7] : memref<3x128xbf16, #tpu.memory_space<vmem>>, vector<3x128xbf16>
    %cst_8 = arith.constant dense<0.000000e+00> : vector<16x128xf32>
    %8 = tpu.matmul %6, %7, %cst_8 {dimension_numbers = #tpu.dot_dimension_numbers<[1], [0], [0], [1], [0, 0, 1, 1], [], []>} : vector<16x3xbf16>, vector<3x128xbf16>, vector<16x128xf32> -> vector<16x128xf32>
    %9 = arith.addf %5, %8 : vector<16x128xf32>
    %c0_9 = arith.constant 0 : index
    %c0_10 = arith.constant 0 : index
    %10 = vector.load %arg7[%c0_9, %c0_10] : memref<1x128xf32, #tpu.memory_space<vmem>>, vector<1x128xf32>
    %11 = vector.broadcast %10 : vector<1x128xf32> to vector<16x128xf32>
    %12 = arith.addf %9, %11 : vector<16x128xf32>
    %cst_11 = arith.constant 0.000000e+00 : f32
    %13 = vector.broadcast %cst_11 : f32 to vector<16x128xf32>
    %14 = arith.maximumf %12, %13 : vector<16x128xf32>
    %15 = arith.truncf %14 : vector<16x128xf32> to vector<16x128xbf16>
    %c0_12 = arith.constant 0 : index
    %c0_13 = arith.constant 0 : index
    %16 = vector.load %arg8[%c0_12, %c0_13] : memref<128x128xbf16, #tpu.memory_space<vmem>>, vector<128x128xbf16>
    %cst_14 = arith.constant dense<0.000000e+00> : vector<16x128xf32>
    %17 = tpu.matmul %15, %16, %cst_14 {dimension_numbers = #tpu.dot_dimension_numbers<[1], [0], [0], [1], [0, 0, 1, 1], [], []>} : vector<16x128xbf16>, vector<128x128xbf16>, vector<16x128xf32> -> vector<16x128xf32>
    %c0_15 = arith.constant 0 : index
    %c0_16 = arith.constant 0 : index
    %18 = vector.load %arg9[%c0_15, %c0_16] : memref<1x128xf32, #tpu.memory_space<vmem>>, vector<1x128xf32>
    %19 = vector.broadcast %18 : vector<1x128xf32> to vector<16x128xf32>
    %20 = arith.addf %17, %19 : vector<16x128xf32>
    %cst_17 = arith.constant 0.000000e+00 : f32
    %21 = vector.broadcast %cst_17 : f32 to vector<16x128xf32>
    %22 = arith.maximumf %20, %21 : vector<16x128xf32>
    %c16_i32 = arith.constant 16 : i32
    %23 = arith.muli %arg1, %c16_i32 : i32
    %24 = tpu.iota {dimensions = array<i32: 0>} : vector<16x1xi32>
    %25 = vector.broadcast %23 : i32 to vector<16x1xi32>
    %26 = arith.addi %25, %24 : vector<16x1xi32>
    %c16_i32_18 = arith.constant 16 : i32
    %27 = vector.broadcast %c16_i32_18 : i32 to vector<16x1xi32>
    %28 = arith.cmpi slt, %26, %27 : vector<16x1xi32>
    %29 = vector.shape_cast %28 : vector<16x1xi1> to vector<16x1x1xi1>
    %c0_19 = arith.constant 0 : index
    %c0_20 = arith.constant 0 : index
    %30 = vector.load %arg4[%c0_19, %c0_20] : memref<16x1xi32, #tpu.memory_space<vmem>>, vector<16x1xi32>
    %31 = vector.shape_cast %30 : vector<16x1xi32> to vector<16x1x1xi32>
    %32 = tpu.iota {dimensions = array<i32: 1>} : vector<16x8x1xi32>
    %33 = vector.broadcast %31 : vector<16x1x1xi32> to vector<16x8x1xi32>
    %34 = arith.cmpi eq, %33, %32 : vector<16x8x1xi32>
    %35 = vector.broadcast %29 : vector<16x1x1xi1> to vector<16x8x1xi1>
    %36 = arith.andi %34, %35 : vector<16x8x1xi1>
    %37 = vector.shape_cast %22 : vector<16x128xf32> to vector<16x1x128xf32>
    %cst_21 = arith.constant 0xFF800000 : f32
    %38 = vector.shape_cast %36 : vector<16x8x1xi1> to vector<16x8x1xi1>
    %39 = vector.broadcast %38 : vector<16x8x1xi1> to vector<16x8x128xi1>
    %40 = vector.shape_cast %37 : vector<16x1x128xf32> to vector<16x1x128xf32>
    %41 = vector.broadcast %40 : vector<16x1x128xf32> to vector<16x8x128xf32>
    %42 = vector.broadcast %cst_21 : f32 to vector<16x8x128xf32>
    %43 = arith.select %39, %41, %42 : vector<16x8x128xi1>, vector<16x8x128xf32>
    %cst_22 = arith.constant dense<0xFF800000> : vector<8x128xf32>
    %44 = vector.multi_reduction <maximumf>, %43, %cst_22 [0] : vector<16x8x128xf32> to vector<8x128xf32>
    %c0_23 = arith.constant 0 : index
    %c0_24 = arith.constant 0 : index
    %45 = vector.load %arg10[%c0_23, %c0_24] : memref<8x128xf32, #tpu.memory_space<vmem>>, vector<8x128xf32>
    %46 = arith.maximumf %45, %44 : vector<8x128xf32>
    %c0_25 = arith.constant 0 : index
    %c0_26 = arith.constant 0 : index
    %47 = vector.load %arg10[%c0_25, %c0_26] : memref<8x128xf32, #tpu.memory_space<vmem>>, vector<8x128xf32>
    tpu.vector_store %arg10[%c0_25, %c0_26], %46 {strides = array<i32>} : memref<8x128xf32, #tpu.memory_space<vmem>>, vector<8x128xf32>,
    return
  }
  func.func @transform_0(%arg0: i32, %arg1: i32) -> (i32, i32) {
    %c0_i32 = arith.constant 0 : i32
    %c0_i32_0 = arith.constant 0 : i32
    return %arg1, %c0_i32 : i32, i32
  }
  func.func @transform_1(%arg0: i32, %arg1: i32) -> (i32, i32) {
    %c0_i32 = arith.constant 0 : i32
    %c0_i32_0 = arith.constant 0 : i32
    return %arg1, %c0_i32 : i32, i32
  }
  func.func @transform_2(%arg0: i32, %arg1: i32) -> (i32, i32) {
    %c0_i32 = arith.constant 0 : i32
    %c0_i32_0 = arith.constant 0 : i32
    return %arg1, %c0_i32 : i32, i32
  }
  func.func @transform_3(%arg0: i32, %arg1: i32) -> (i32, i32) {
    %c0_i32 = arith.constant 0 : i32
    %c0_i32_0 = arith.constant 0 : i32
    %c0_i32_1 = arith.constant 0 : i32
    return %c0_i32, %c0_i32_0 : i32, i32
  }
  func.func @transform_4(%arg0: i32, %arg1: i32) -> (i32, i32) {
    %c0_i32 = arith.constant 0 : i32
    %c0_i32_0 = arith.constant 0 : i32
    %c0_i32_1 = arith.constant 0 : i32
    return %c0_i32, %c0_i32_0 : i32, i32
  }
  func.func @transform_5(%arg0: i32, %arg1: i32) -> (i32, i32) {
    %c0_i32 = arith.constant 0 : i32
    %c0_i32_0 = arith.constant 0 : i32
    %c0_i32_1 = arith.constant 0 : i32
    return %c0_i32, %c0_i32_0 : i32, i32
  }
  func.func @transform_6(%arg0: i32, %arg1: i32) -> (i32, i32) {
    %c0_i32 = arith.constant 0 : i32
    %c0_i32_0 = arith.constant 0 : i32
    return %c0_i32, %arg0 : i32, i32
  }
  func.func @transform_7(%arg0: i32, %arg1: i32) -> (i32, i32) {
    %c0_i32 = arith.constant 0 : i32
    %c0_i32_0 = arith.constant 0 : i32
    return %c0_i32, %arg0 : i32, i32
  }
  func.func @transform_8(%arg0: i32, %arg1: i32) -> (i32, i32) {
    %c0_i32 = arith.constant 0 : i32
    %c0_i32_0 = arith.constant 0 : i32
    return %c0_i32, %arg0 : i32, i32
  }
}

</mosaic_0001>

<bundles_post_ra>
// kernel: tpu_custom_call.1
= control target key start
LH: loop header
LB: loop body
LE: loop exit
PB: predicated region body
PF: predicated region fallthrough
CT: control target
= control target key end

     0   :  { %13 = vsyncpa [#allocation3], 0  ;;  %s849_s0 = inlined_call_operand.vmem [shape: bf16[16,4], index: 0, kind: input, shape index: {}]   ;;  %s850_s1 = inlined_call_operand.vmem [shape: bf16[16,3], index: 1, kind: input, shape index: {}]   ;;  %s851_s2 = inlined_call_operand.vmem [shape: s32[16,1], index: 2, kind: input, shape index: {}]   ;;  %s852_s3 = inlined_call_operand.vmem [shape: bf16[4,128], index: 3, kind: input, shape index: {}]   ;;  %s853_s4 = inlined_call_operand.vmem [shape: bf16[3,128], index: 4, kind: input, shape index: {}]   ;;  %s854_s5 = inlined_call_operand.vmem [shape: f32[1,128], index: 5, kind: input, shape index: {}]   ;;  %s855_s6 = inlined_call_operand.hbm [shape: bf16[128,128], index: 6, kind: input, shape index: {}]   ;;  %s856_s7 = inlined_call_operand.vmem [shape: f32[1,128], index: 7, kind: input, shape index: {}]   ;;  %s857_s8 = inlined_call_operand.hbm [shape: f32[8,128], index: 8, kind: output, shape index: {}]  }
   0x1   :  { %14 = vsyncpa [#allocation4], 0  ;;  %s31_s29 = sshll.u32 %s855_s6, 4  ;;  %s642_s30 = smov [#allocation2]   ;;  %s32_s29 = int_to_ptr.hbm [resolvable:$true] %s31_s29 }
   0x2   :  { %s33_s9 = sshll.u32 %s642_s30, 4  ;;  %s643_s10 = smov 64   ;;  %s34_s9 = int_to_ptr.vmem [resolvable:$true] %s33_s9 }
   0x3   :  { %s644_s11 = smov 4  }
   0x4   :  { %39 = dma.hbm_to_vmem [thread:$0]  %s32_s29, 1024, %s34_s9, [#allocation3], %s643_s10, %s643_s10, %s644_s11  }
   0x5   :  { %638 = dma.done.wait [#allocation3], 1024  }
   0x6   :  { %639 = vsyncadd [#allocation3], 4294966272  ;;  %vm67_vm0 = vcmask 1040384   ;;  %vm68_vm1 = vcmask 1041408   ;;  %v645_v0 = vmov 65535   ;;  %v646_v2 = vmov 0  }
   0x7   :  { %v69_v1 = vsel %vm67_vm0, 4294967295, %v645_v0  ;;  %585 = vset.pattern.permute.xlu0 %v646_v2  ;;  %586 = vset.pattern.permute.xlu1 %v646_v2  ;;  %v208_v3 = vlaneseq  ;;  %v647_v5 = vmov 1   ;;  %v54_v7 = vld [vmem:[%s852_s3] sm:$0x3]  ;;  %vm93_vm2 = vcmask 31744   ;;  %v576_v15 = vld [vmem:[#allocation2 + $0x38] sm:$0xff] }
   0x8   :  { %587 = vset.pattern.permute.xlu2 %v646_v2  ;;  %v70_v4 = vsel %vm68_vm1, %v69_v1, 0  ;;  %v701_v6 = vperm.slane %v647_v5, 0  ;;  %v57_v8 = vld [vmem:[%s853_s4] sm:$0x3]  ;;  %v98_v10 = vsel %vm68_vm1, %v54_v7, 0  ;;  %v219_v14 = vperm.slane %v647_v5, 1  ;;  %191 = vmatpush.bf16.msra.mxu2 %v576_v15 }
   0x9   :  { %v709_v9 = vshrl.u32 %v208_v3, 7  ;;  %v72_v11 = vand.u32 %v70_v4, %v57_v8  ;;  %v567_v12 = vld [vmem:[%s849_s0] sm:$0xff]  ;;  %v721_v16 = vperm.slane %v647_v5, 2  ;;  %107 = vmatpush.bf16.msra.mxu1 %v98_v10  ;;  %vm63_vm4 = vcmask 23552   ;;  %v575_v21 = vld [vmem:[#allocation2 + $0x30] sm:$0xff]  ;;  %v574_v29 = vld [vmem:[#allocation2 + $0x28] sm:$0xff] }
   0xa   :  { %v717_v13 = vld [vmem:[%s851_s2] sm:$0xff]  ;;  %vm234_vm3 = vcmp.ne.s32.totalorder %v701_v6, 0  ;;  %vm235_vm7 = vcmp.ne.s32.totalorder %v219_v14, 0  ;;  %v737_v25 = vperm.slane %v647_v5, 3  ;;  %v750_v31 = vperm.slane %v647_v5, 6  ;;  %v755_v33 = vld [vmem:[%s851_s2 + $0x8] sm:$0xff] }
   0xb   :  { %v568_v17 = vld [vmem:[%s850_s1] sm:$0xff]  ;;  %v266_v18 = vperm.slane %v717_v13, 0  ;;  %v252_v19 = vrot.slane %v717_v13, 1  ;;  %v253_v20 = vrot.slane %v717_v13, 2  ;;  %81 = vmatpush.bf16.msra.mxu0 %v72_v11  ;;  %v254_v22 = vrot.slane %v717_v13, 3  ;;  %v572_v47 = vld [vmem:[#allocation2 + $0x18] sm:$0xff] }
   0xc   :  { %534 = vmatmul.msk.bf16.vlgmr.msra.gmra.mxu1 %vm93_vm2, %v567_v12  ;;  %vm236_vm8 = vcmp.ne.s32.totalorder %v721_v16, 0  ;;  %v257_v28 = vrot.slane %v717_v13, 6  ;;  %192 = vmatpush.bf16.msra.mxu2 %v575_v21  ;;  %vm237_vm13 = vcmp.ne.s32.totalorder %v737_v25, 0  ;;  %v573_v34 = vld [vmem:[#allocation2 + $0x20] sm:$0xff]  ;;  %vm240_vm0 = vcmp.ne.s32.totalorder %v750_v31, 0  ;;  %v571_v50 = vld [vmem:[#allocation2 + $0x10] sm:$0xff] }
   0xd   :  { %vm282_vm5 = vcmp.eq.s32.totalorder %v266_v18, %v709_v9  ;;  %v267_v23 = vperm.slane %v252_v19, 0  ;;  %v268_v24 = vperm.slane %v253_v20, 0  ;;  %v269_v26 = vperm.slane %v254_v22, 0  ;;  %v570_v57 = vld [vmem:[#allocation2 + $0x8] sm:$0xff]  ;;  %v569_v61 = vld [vmem:[#allocation2] sm:$0xff]  ;;  %s515_s24 = sshll.u32 %s857_s8, 4  ;;  %s516_s24 = int_to_ptr.hbm [resolvable:$true] %s515_s24 }
   0xe   :  { %vm330_vm6 = vmand %vm282_vm5, %vm234_vm3  ;;  %529 = vmatmul.msk.bf16.vlgmr.msra.gmra.mxu0 %vm63_vm4, %v568_v17  ;;  %v272_v32 = vperm.slane %v257_v28, 0  ;;  %v259_v36 = vrot.slane %v755_v33, 1  ;;  %v258_v41 = vrot.slane %v717_v13, 7  ;;  %v262_v42 = vrot.slane %v755_v33, 4  ;;  %v588_v17 = vld [vmem:[%s854_s5] ss:$0 sm:$0xff] }
   0xf   :  { %v362_v27 = vsel %vm330_vm6, 1, %v646_v2  ;;  %vm283_vm9 = vcmp.eq.s32.totalorder %v267_v23, %v709_v9  ;;  %vm284_vm10 = vcmp.eq.s32.totalorder %v268_v24, %v709_v9  ;;  %vm285_vm14 = vcmp.eq.s32.totalorder %v269_v26, %v709_v9 }
  0x10   :  { %379 = vperm.xlu0 %585, %v362_v27   ;;  %vm332_vm11 = vmand %vm284_vm10, %vm236_vm8  ;;  %193 = vmatpush.bf16.msra.mxu2 %v574_v29  ;;  %vm288_vm1 = vcmp.eq.s32.totalorder %v272_v32, %v709_v9  ;;  %v275_v38 = vperm.slane %v259_v36, 0  ;;  %v225_v43 = vperm.slane %v647_v5, 7  ;;  %v273_v44 = vperm.slane %v258_v41, 0 }
  0x11   :  { %vm331_vm12 = vmand %vm283_vm9, %vm235_vm7  ;;  %v364_v30 = vsel %vm332_vm11, 1, %v646_v2  ;;  %v222_v45 = vperm.slane %v647_v5, 4  ;;  %v278_v46 = vperm.slane %v262_v42, 0  ;;  %v255_v51 = vrot.slane %v717_v13, 4 }
  0x12   :  { %385 = vperm.xlu1 %586, %v364_v30   ;;  %v363_v35 = vsel %vm331_vm12, 1, %v646_v2  ;;  %vm333_vm15 = vmand %vm285_vm14, %vm237_vm13  ;;  %vm291_vm4 = vcmp.eq.s32.totalorder %v275_v38, %v709_v9  ;;  %vm241_vm6 = vcmp.ne.s32.totalorder %v225_v43, 0  ;;  %vm289_vm9 = vcmp.eq.s32.totalorder %v273_v44, %v709_v9 }
  0x13   :  { %v365_v37 = vsel %vm333_vm15, 1, %v646_v2  ;;  %vm336_vm2 = vmand %vm288_vm1, %vm240_vm0  ;;  %vm238_vm10 = vcmp.ne.s32.totalorder %v222_v45, 0  ;;  %v260_v52 = vrot.slane %v755_v33, 2  ;;  %v265_v53 = vrot.slane %v755_v33, 7 }
  0x14   :  { %194 = vmatpush.bf16.msra.mxu2 %v573_v34  ;;  %v368_v39 = vsel %vm336_vm2, 1, %v646_v2  ;;  %vm339_vm5 = vmand %vm291_vm4, %vm235_vm7  ;;  %vm294_vm7 = vcmp.eq.s32.totalorder %v278_v46, %v709_v9  ;;  %v270_v54 = vperm.slane %v255_v51, 0  ;;  %v256_v62 = vrot.slane %v717_v13, 5 }
  0x15   :  { %v371_v40 = vsel %vm339_vm5, 1, %v646_v2  ;;  %vm337_vm11 = vmand %vm289_vm9, %vm241_vm6  ;;  %v276_v55 = vperm.slane %v260_v52, 0  ;;  %v281_v56 = vperm.slane %v265_v53, 0  ;;  %v263_v63 = vrot.slane %v755_v33, 5 }
  0x16   :  { %v369_v48 = vsel %vm337_vm11, 1, %v646_v2  ;;  %vm342_vm12 = vmand %vm294_vm7, %vm238_vm10  ;;  %vm286_vm14 = vcmp.eq.s32.totalorder %v270_v54, %v709_v9  ;;  %v223_v0 = vperm.slane %v647_v5, 5  ;;  %v271_v1 = vperm.slane %v256_v62, 0 }
  0x17   :  { %v374_v49 = vsel %vm342_vm12, 1, %v646_v2  ;;  %vm292_vm15 = vcmp.eq.s32.totalorder %v276_v55, %v709_v9  ;;  %vm297_vm1 = vcmp.eq.s32.totalorder %v281_v56, %v709_v9  ;;  %vm334_vm2 = vmand %vm286_vm14, %vm238_vm10  ;;  %v279_v3 = vperm.slane %v263_v63, 0 }
  0x18   :  { %382 = vperm.xlu0 %585, %v363_v35   ;;  %195 = vmatpush.bf16.msra.mxu2 %v572_v47  ;;  %v366_v58 = vsel %vm334_vm2, 1, %v646_v2  ;;  %vm340_vm4 = vmand %vm292_vm15, %vm236_vm8  ;;  %vm239_vm8 = vcmp.ne.s32.totalorder %v223_v0, 0  ;;  %vm287_vm9 = vcmp.eq.s32.totalorder %v271_v1, %v709_v9  ;;  %v274_v4 = vperm.slane %v755_v33, 0  ;;  %v589_v35 = vld [vmem:[%s856_s7] ss:$0 sm:$0xff]  ;;  %s648_s7 = smov [#allocation5]  }
  0x19   :  { %391 = vperm.xlu2 %587, %v366_v58   ;;  %v372_v59 = vsel %vm340_vm4, 1, %v646_v2  ;;  %vm345_vm5 = vmand %vm297_vm1, %vm241_vm6  ;;  %vm295_vm10 = vcmp.eq.s32.totalorder %v279_v3, %v709_v9  ;;  %v261_v8 = vrot.slane %v755_v33, 3  ;;  %v264_v12 = vrot.slane %v755_v33, 6  ;;  %s513_s21 = sshll.u32 %s648_s7, 4  ;;  %s514_s21 = int_to_ptr.vmem [resolvable:$true] %s513_s21 }
  0x1a   :  { %388 = vperm.xlu1 %586, %v365_v37   ;;  %v377_v60 = vsel %vm345_vm5, 1, %v646_v2  ;;  %vm335_vm6 = vmand %vm287_vm9, %vm239_vm8  ;;  %vm290_vm11 = vcmp.eq.s32.totalorder %v274_v4, %v709_v9 }
  0x1b   :  { %v367_v7 = vsel %vm335_vm6, 1, %v646_v2  ;;  %vm343_vm7 = vmand %vm295_vm10, %vm239_vm8  ;;  %v277_v5 = vperm.slane %v261_v8, 0  ;;  %v280_v13 = vperm.slane %v264_v12, 0 }
  0x1c   :  { %196 = vmatpush.bf16.msra.mxu2 %v571_v50  ;;  %v375_v10 = vsel %vm343_vm7, 1, %v646_v2  ;;  %vm338_vm12 = vmand %vm290_vm11, %vm234_vm3 }
  0x1d   :  { %v370_v11 = vsel %vm338_vm12, 1, %v646_v2  ;;  %vm293_vm14 = vcmp.eq.s32.totalorder %v277_v5, %v709_v9  ;;  %vm296_vm1 = vcmp.eq.s32.totalorder %v280_v13, %v709_v9 }
  0x1e   :  { %vm341_vm15 = vmand %vm293_vm14, %vm237_vm13 }
  0x1f   :  { %v373_v16 = vsel %vm341_vm15, 1, %v646_v2  ;;  %vm344_vm3 = vmand %vm296_vm1, %vm240_vm0 }
  0x20   :  { %397 = vperm.xlu0 %585, %v368_v39   ;;  %197 = vmatpush.bf16.msra.mxu2 %v570_v57  ;;  %v376_v20 = vsel %vm344_vm3, 1, %v646_v2 }
  0x21   :  { %394 = vperm.xlu2 %587, %v367_v7  }
  0x22   :  { %400 = vperm.xlu1 %586, %v369_v48  }
  0x24   :  { %198 = vmatpush.bf16.msra.mxu2 %v569_v61 }
  0x28   :  { %406 = vperm.xlu0 %585, %v371_v40  }
  0x29   :  { %403 = vperm.xlu2 %587, %v370_v11  }
  0x2a   :  { %409 = vperm.xlu1 %586, %v372_v59  }
  0x30   :  { %415 = vperm.xlu0 %585, %v374_v49  }
  0x31   :  { %412 = vperm.xlu2 %587, %v373_v16  }
  0x32   :  { %418 = vperm.xlu1 %586, %v375_v10  }
  0x38   :  { %424 = vperm.xlu0 %585, %v377_v60  }
  0x39   :  { %421 = vperm.xlu2 %587, %v376_v20  }
  0x73   :  { %v392_v28 = vpop.permute.xlu2 %391 }
  0x74   :  { %vm430_vm4 = vcmp.eq.s32.totalorder %v392_v28, 1 }
  0x7b   :  { %v395_v32 = vpop.permute.xlu2 %394 }
  0x7c   :  { %vm431_vm8 = vcmp.eq.s32.totalorder %v395_v32, 1 }
  0x82   :  { %v380_v26 = vpop.permute.xlu0 %379 }
  0x83   :  { %v820_v34 = vpop.permute.xlu2 %403  ;;  %vm426_vm13 = vcmp.eq.s32.totalorder %v380_v26, 1 }
  0x84   :  { %v386_v29 = vpop.permute.xlu1 %385  ;;  %vm434_vm10 = vcmp.eq.s32.totalorder %v820_v34, 1 }
  0x85   :  { %vm428_vm2 = vcmp.eq.s32.totalorder %v386_v29, 1 }
  0x89   :  { %v109_v14 = vpop.f32.mrf.mxu1 }
  0x8a   :  { %v383_v27 = vpop.permute.xlu0 %382 }
  0x8b   :  { %v83_v15 = vpop.f32.mrf.mxu0  ;;  %vm427_vm0 = vcmp.eq.s32.totalorder %v383_v27, 1  ;;  %v413_v40 = vpop.permute.xlu2 %412 }
  0x8c   :  { %v110_v6 = vadd.f32 %v109_v14, %v83_v15  ;;  %v389_v31 = vpop.permute.xlu1 %388  ;;  %vm437_vm12 = vcmp.eq.s32.totalorder %v413_v40, 1 }
  0x8d   :  { %vm429_vm9 = vcmp.eq.s32.totalorder %v389_v31, 1 }
  0x8e   :  { %v118_v21 = vadd.f32 %v588_v17, %v110_v6 }
  0x90   :  { %v120_v24 = vmax.f32 %v118_v21, 0.0 }
  0x91   :  { %v111_v18 = vpop.f32.mrf.mxu1 }
  0x92   :  { %v398_v30 = vpop.permute.xlu0 %397 }
  0x93   :  { %v85_v19 = vpop.f32.mrf.mxu0  ;;  %vm432_vm5 = vcmp.eq.s32.totalorder %v398_v30, 1 }
  0x94   :  { %v112_v22 = vadd.f32 %v111_v18, %v85_v19  ;;  %v401_v2 = vpop.permute.xlu1 %400  ;;  %v422_v18 = vpop.permute.xlu2 %421 }
  0x95   :  { %vm433_vm7 = vcmp.eq.s32.totalorder %v401_v2, 1  ;;  %vm440_vm1 = vcmp.eq.s32.totalorder %v422_v18, 1 }
  0x96   :  { %v119_v23 = vadd.f32 %v588_v17, %v112_v22 }
  0x98   :  { %v121_v25 = vmax.f32 %v119_v23, 0.0 }
  0x9a   :  { %v122_v9 = vpack.c.bf16 %v121_v25, %v120_v24  ;;  %v818_v33 = vpop.permute.xlu0 %406 }
  0x9b   :  { %vm435_vm6 = vcmp.eq.s32.totalorder %v818_v33, 1 }
  0x9c   :  { %199 = vmatmul.bf16.vlgmr.msra.gmra.mxu2 %v122_v9  ;;  %v410_v45 = vpop.permute.xlu1 %409 }
  0x9d   :  { %vm436_vm14 = vcmp.eq.s32.totalorder %v410_v45, 1 }
  0xa2   :  { %v825_v39 = vpop.permute.xlu0 %415 }
  0xa3   :  { %vm438_vm11 = vcmp.eq.s32.totalorder %v825_v39, 1 }
  0xa4   :  { %v419_v23 = vpop.permute.xlu1 %418 }
  0xa5   :  { %vm439_vm3 = vcmp.eq.s32.totalorder %v419_v23, 1 }
  0xaa   :  { %v425_v17 = vpop.permute.xlu0 %424 }
  0xab   :  { %vm441_vm15 = vcmp.eq.s32.totalorder %v425_v17, 1 }
 0x11f   :  { %v200_v36 = vpop.f32.mrf.mxu2 }
 0x120   :  { %v201_v37 = vadd.f32 %v589_v35, %v200_v36 }
 0x122   :  { %v205_v38 = vmax.f32 %v201_v37, 0.0 }
 0x124   :  { %v348_v41 = vrot.slane %v205_v38, 1  ;;  %v349_v42 = vrot.slane %v205_v38, 2  ;;  %v350_v43 = vrot.slane %v205_v38, 3  ;;  %v351_v44 = vrot.slane %v205_v38, 4 }
 0x125   :  { %v352_v46 = vrot.slane %v205_v38, 5  ;;  %v353_v47 = vrot.slane %v205_v38, 6  ;;  %v354_v48 = vrot.slane %v205_v38, 7  ;;  %v442_v49 = vperm.slane %v205_v38, 0 }
 0x126   :  { %v443_v50 = vperm.slane %v348_v41, 0  ;;  %v444_v51 = vperm.slane %v349_v42, 0  ;;  %v445_v52 = vperm.slane %v350_v43, 0  ;;  %v446_v53 = vperm.slane %v351_v44, 0 }
 0x127   :  { %v202_v54 = vpop.f32.mrf.mxu2  ;;  %v447_v55 = vperm.slane %v352_v46, 0  ;;  %v448_v56 = vperm.slane %v353_v47, 0  ;;  %v449_v57 = vperm.slane %v354_v48, 0  ;;  %v474_v1 = vsel %vm426_vm13, %v442_v49, -inf }
 0x128   :  { %v203_v58 = vadd.f32 %v589_v35, %v202_v54  ;;  %v475_v59 = vsel %vm427_vm0, %v443_v50, -inf  ;;  %v476_v60 = vsel %vm428_vm2, %v444_v51, -inf  ;;  %v478_v61 = vsel %vm430_vm4, %v446_v53, -inf }
 0x129   :  { %v479_v62 = vsel %vm431_vm8, %v447_v55, -inf  ;;  %v480_v63 = vsel %vm432_vm5, %v448_v56, -inf  ;;  %v477_v3 = vsel %vm429_vm9, %v445_v52, -inf  ;;  %v481_v4 = vsel %vm433_vm7, %v449_v57, -inf }
 0x12a   :  { %v206_v0 = vmax.f32 %v203_v58, 0.0  ;;  %v490_v7 = vmax.f32 %v474_v1, %v478_v61  ;;  %v491_v8 = vmax.f32 %v475_v59, %v479_v62  ;;  %v492_v10 = vmax.f32 %v476_v60, %v480_v63 }
 0x12b   :  { %v493_v30 = vmax.f32 %v477_v3, %v481_v4 }
 0x12c   :  { %v355_v5 = vrot.slane %v206_v0, 1  ;;  %v356_v11 = vrot.slane %v206_v0, 2  ;;  %v357_v12 = vrot.slane %v206_v0, 3  ;;  %v358_v13 = vrot.slane %v206_v0, 4 }
 0x12d   :  { %v359_v14 = vrot.slane %v206_v0, 5  ;;  %v360_v15 = vrot.slane %v206_v0, 6  ;;  %v361_v16 = vrot.slane %v206_v0, 7  ;;  %v450_v6 = vperm.slane %v206_v0, 0 }
 0x12e   :  { %v451_v19 = vperm.slane %v355_v5, 0  ;;  %v452_v20 = vperm.slane %v356_v11, 0  ;;  %v453_v21 = vperm.slane %v357_v12, 0  ;;  %v454_v22 = vperm.slane %v358_v13, 0 }
 0x12f   :  { %v455_v24 = vperm.slane %v359_v14, 0  ;;  %v456_v25 = vperm.slane %v360_v15, 0  ;;  %v457_v9 = vperm.slane %v361_v16, 0  ;;  %v482_v26 = vsel %vm434_vm10, %v450_v6, -inf }
 0x130   :  { %v483_v27 = vsel %vm435_vm6, %v451_v19, -inf  ;;  %v484_v28 = vsel %vm436_vm14, %v452_v20, -inf  ;;  %v485_v29 = vsel %vm437_vm12, %v453_v21, -inf  ;;  %v486_v32 = vsel %vm438_vm11, %v454_v22, -inf }
 0x131   :  { %v494_v31 = vmax.f32 %v490_v7, %v482_v26  ;;  %v495_v2 = vmax.f32 %v491_v8, %v483_v27  ;;  %v496_v35 = vmax.f32 %v492_v10, %v484_v28  ;;  %v497_v36 = vmax.f32 %v493_v30, %v485_v29 }
 0x132   :  { %v487_v34 = vsel %vm439_vm3, %v455_v24, -inf  ;;  %v488_v37 = vsel %vm440_vm1, %v456_v25, -inf  ;;  %v489_v38 = vsel %vm441_vm15, %v457_v9, -inf }
 0x133   :  { %v498_v33 = vmax.f32 %v494_v31, %v486_v32  ;;  %v499_v41 = vmax.f32 %v495_v2, %v487_v34  ;;  %v500_v42 = vmax.f32 %v496_v35, %v488_v37  ;;  %v501_v43 = vmax.f32 %v497_v36, %v489_v38 }
 0x135   :  { %v502_v40 = vmax.f32 %v498_v33, %v499_v41  ;;  %v503_v44 = vmax.f32 %v500_v42, %v501_v43 }
 0x137   :  { %v504_v39 = vmax.f32 %v502_v40, %v503_v44 }
 0x139   :  { %507 = vst [vmem:[#allocation5] sm:$0xff] %v504_v39 }
 0x13a   :  { %518 = dma.vmem_to_hbm [thread:$0]  %s514_s21, 128, %s516_s24, [#allocation4]  }
 0x13b   :  { %640 = dma.done.wait [#allocation4], 128  }
 0x13c   :  { %641 = vsyncadd [#allocation4], 4294967168 }
 0x13d   :  { %523 = vsyncpa [#allocation3], 1 }
 0x13e   :  { %524 = vsyncpa [#allocation4], 1 }

</bundles_post_ra>
